<compile_context>
chip_gen: v6e
topology: v6e:2x2x1
jax: 0.10.0
libtpu: 0.0.40
codegen_flags: <defaults>
</compile_context>

<pallas_src>
import math
import functools

import jax
import jax.numpy as jnp
from jax.experimental import pallas as pl
from jax.experimental.pallas import tpu as pltpu


# --------------------------------------------------------------------------- #
# helpers
# --------------------------------------------------------------------------- #
def _pair(v):
    if isinstance(v, (tuple, list)):
        return tuple(v)
    return (v, v)


def _same_pad_amounts(h, w, kernel_size, stride):
    (k1, k2), (s1, s2) = _pair(kernel_size), _pair(stride)
    h_pad = s1 * math.ceil(h / s1 - 1) + k1 - h
    w_pad = s2 * math.ceil(w / s2 - 1) + k2 - w
    top, bottom = ((h_pad // 2, h_pad - h_pad // 2) if h_pad else (0, 0))
    left, right = ((w_pad // 2, w_pad - w_pad // 2) if w_pad else (0, 0))
    return top, bottom, left, right


def _cdiv(a, b):
    return -(-a // b)


def _round_up(a, b):
    return _cdiv(a, b) * b


# --------------------------------------------------------------------------- #
# kernels
# --------------------------------------------------------------------------- #
def _same_pad_kernel_flat(x_ref, o_ref, *, top, left, h, w, w_out, value):
    """Lane-dense path.  x_ref: (bm, h*w); o_ref: (bm, h_out*w_out).

    Each image's rows are flattened onto the 128-lane axis, so DMAs and stores
    are lane-dense even for tiny feature maps.  Pad gaps (right pad of row r +
    left pad of row r+1, plus the top/bottom bands) are written once each and
    the interior rows are copied exactly once — no element is written twice.
    """
    bm, n_out = o_ref.shape
    dt = o_ref.dtype

    def fill(lo, hi):
        if hi > lo:                               # static -> no empty stores
            o_ref[:, lo:hi] = jnp.full((bm, hi - lo), value, dt)

    if left == 0 and w == w_out:
        # No horizontal pad: all h input rows form one contiguous lane run.
        fill(0, top * w_out)
        o_ref[:, top * w_out:top * w_out + h * w] = x_ref[...]
        fill(top * w_out + h * w, n_out)
    else:
        prev_end = 0
        for r in range(h):                        # h <= 128 (gated in wrapper)
            dst = (top + r) * w_out + left
            fill(prev_end, dst)                   # coalesced pad gap
            o_ref[:, dst:dst + w] = x_ref[:, r * w:(r + 1) * w]
            prev_end = dst + w
        fill(prev_end, n_out)


def _same_pad_kernel_3d(x_ref, o_ref, *, top, left, h, w, value):
    """Wide-map path (W >= 128, already lane-dense).

    x_ref: (bm, h, w); o_ref: (bm, h_out, w_out).  Border bands/strips get the
    pad value, interior is copied once (no full-tile fill + overwrite).
    """
    bm, h_out, w_out = o_ref.shape
    dt = o_ref.dtype
    if top:
        o_ref[:, :top, :] = jnp.full((bm, top, w_out), value, dt)
    if top + h < h_out:
        o_ref[:, top + h:, :] = jnp.full((bm, h_out - top - h, w_out), value, dt)
    if left:
        o_ref[:, top:top + h, :left] = jnp.full((bm, h, left), value, dt)
    if left + w < w_out:
        o_ref[:, top:top + h, left + w:] = jnp.full((bm, h, w_out - left - w), value, dt)
    o_ref[:, top:top + h, left:left + w] = x_ref[...]


# --------------------------------------------------------------------------- #
# wrapper
# --------------------------------------------------------------------------- #
@functools.partial(
    jax.jit,
    static_argnames=("kernel_size", "stride", "mode", "value",
                     "block_bytes_budget", "min_steps"),
)
def same_pad_2d(x, *, kernel_size, stride, mode="constant", value=0.0,
                block_bytes_budget=24 * 1024 * 1024, min_steps=8):
    """SamePad2d.forward(x) for NCHW input via a Pallas TPU kernel."""
    if mode != "constant":
        # TODO(synk): 'reflect' / 'replicate' padding modes are not implemented
        # in the Pallas kernel; only 'constant' (the module default) is.
        raise NotImplementedError("SamePad2d Pallas kernel supports mode='constant' only")

    n, c, h, w = x.shape
    top, bottom, left, right = _same_pad_amounts(h, w, kernel_size, stride)

    # Negative pads (possible when kernel < stride) crop, exactly as F.pad does.
    crop_t, crop_b = max(0, -top), max(0, -bottom)
    crop_l, crop_r = max(0, -left), max(0, -right)
    if crop_t or crop_b or crop_l or crop_r:
        x = x[:, :, crop_t:h - crop_b, crop_l:w - crop_r]
        h, w = x.shape[2], x.shape[3]
        top, bottom = max(0, top), max(0, bottom)
        left, right = max(0, left), max(0, right)

    if top == bottom == left == right == 0:
        return x

    h_out, w_out = h + top + bottom, w + left + right
    m = n * c
    itemsize = jnp.dtype(x.dtype).itemsize
    sub = 8 * max(1, 4 // itemsize)        # sublane granule: 8 f32 / 16 bf16 / 32 i8
    LANE = 128

    # Lane-dense path for narrow feature maps; gate on h so the unrolled
    # per-row copy in the kernel stays small.
    use_flat = (w_out < LANE) and (h <= 128)

    # Layout-aware per-image VMEM cost ((sublane, 128) padded tiles, x2 because
    # the Pallas pipeline double-buffers each block).
    if use_flat:
        in_lanes = _round_up(h * w, LANE)
        out_lanes = _round_up(h_out * w_out, LANE)
        per_image = (in_lanes + out_lanes) * itemsize * 2
    else:
        in_tile = _round_up(h, sub) * _round_up(w, LANE)
        out_tile = _round_up(h_out, sub) * _round_up(w_out, LANE)
        per_image = (in_tile + out_tile) * itemsize * 2

    vmem_limit_bytes = block_bytes_budget + 8 * 1024 * 1024  # 24 MiB data + headroom

    if per_image > block_bytes_budget:
        # TODO(synk): add an H-tiled (row-band) second grid axis so one huge
        # image fits per-TC VMEM (v7x: 64 MiB); fall back to XLA pad for now.
        return jnp.pad(x, ((0, 0), (0, 0), (top, bottom), (left, right)),
                       mode="constant", constant_values=value)

    # Block selection:
    #  * as many images per step as fit the VMEM budget,
    #  * cdiv blocking (partial last block) so awkward N*C never forces bm=1,
    #  * at least `min_steps` (even) steps so step i+1's input DMA overlaps
    #    step i's output writeback and both v7x TensorCores get work.
    bm_budget = max(1, block_bytes_budget // per_image)
    steps = max(min(m, min_steps), _cdiv(m, bm_budget))
    if steps % 2 and steps < m:
        steps += 1
    bm = _cdiv(m, steps)
    if use_flat and bm < m:
        # In the flat layout bm sits on the sublane axis of the block: keep it
        # a multiple of the sublane granule (or equal to the full dim).
        bm = min(m, _round_up(bm, sub))
    grid = (_cdiv(m, bm),)

    if use_flat:
        x_in = x.reshape(m, h * w)
        kernel = functools.partial(_same_pad_kernel_flat, top=top, left=left,
                                   h=h, w=w, w_out=w_out, value=float(value))
        out_shape = jax.ShapeDtypeStruct((m, h_out * w_out), x.dtype)
        in_specs = [pl.BlockSpec((bm, h * w), lambda i: (i, 0))]
        out_specs = pl.BlockSpec((bm, h_out * w_out), lambda i: (i, 0))
    else:
        x_in = x.reshape(m, h, w)
        kernel = functools.partial(_same_pad_kernel_3d, top=top, left=left,
                                   h=h, w=w, value=float(value))
        out_shape = jax.ShapeDtypeStruct((m, h_out, w_out), x.dtype)
        in_specs = [pl.BlockSpec((bm, h, w), lambda i: (i, 0, 0))]
        out_specs = pl.BlockSpec((bm, h_out, w_out), lambda i: (i, 0, 0))

    out = pl.pallas_call(
        kernel,
        out_shape=out_shape,
        grid_spec=pltpu.PrefetchScalarGridSpec(
            num_scalar_prefetch=0,
            grid=grid,
            in_specs=in_specs,
            out_specs=out_specs,
        ),
        compiler_params=pltpu.CompilerParams(
            dimension_semantics=("parallel",),
            vmem_limit_bytes=vmem_limit_bytes,
        ),
        cost_estimate=pl.CostEstimate(
            flops=0,
            transcendentals=0,
            bytes_accessed=(m * h * w + m * h_out * w_out) * itemsize,
        ),
    )(x_in)

    return out.reshape(n, c, h_out, w_out)


# --------------------------------------------------------------------------- #
# reference + demo
# --------------------------------------------------------------------------- #
def _ref_same_pad_2d(x, kernel_size, stride, value=0.0):
    """Pure-JAX reference (jnp.pad) matching the PyTorch module."""
    _, _, h, w = x.shape
    top, bottom, left, right = _same_pad_amounts(h, w, kernel_size, stride)
    return jnp.pad(
        x, ((0, 0), (0, 0), (top, bottom), (left, right)),
        mode="constant", constant_values=value,
    )


if __name__ == "__main__":
    key = jax.random.PRNGKey(0)
    ok = True

    # Narrow feature map (W_out < 128) -> lane-dense flattened path.
    x = jax.random.normal(key, (2, 4, 16, 16), dtype=jnp.float32)

    # kernel=3, stride=1 -> symmetric (1,1,1,1) padding, 18x18.
    y1 = jax.block_until_ready(same_pad_2d(x, kernel_size=3, stride=1))
    r1 = _ref_same_pad_2d(x, 3, 1)
    ok &= (y1.shape == (2, 4, 18, 18)) and bool(jnp.allclose(y1, r1))

    # kernel=3, stride=2 -> asymmetric (top=0, bottom=1, left=0, right=1), 17x17.
    y2 = jax.block_until_ready(same_pad_2d(x, kernel_size=3, stride=2))
    r2 = _ref_same_pad_2d(x, 3, 2)
    ok &= (y2.shape == (2, 4, 17, 17)) and bool(jnp.allclose(y2, r2))

    # kernel=5, stride=1 with a non-zero fill value, 20x20.
    y3 = jax.block_until_ready(same_pad_2d(x, kernel_size=5, stride=1, value=-2.5))
    r3 = _ref_same_pad_2d(x, 5, 1, value=-2.5)
    ok &= (y3.shape == (2, 4, 20, 20)) and bool(jnp.allclose(y3, r3))

    # Awkward N*C (=15): multi-step cdiv grid with a partial last block.
    key, k4 = jax.random.split(key)
    x4 = jax.random.normal(k4, (3, 5, 16, 16), dtype=jnp.float32)
    y4 = jax.block_until_ready(same_pad_2d(x4, kernel_size=3, stride=1))
    r4 = _ref_same_pad_2d(x4, 3, 1)
    ok &= (y4.shape == (3, 5, 18, 18)) and bool(jnp.allclose(y4, r4))

    # Wide feature map (W_out >= 128) -> 3-D (already lane-dense) path.
    key, k5 = jax.random.split(key)
    x5 = jax.random.normal(k5, (2, 3, 9, 160), dtype=jnp.float32)
    y5 = jax.block_until_ready(same_pad_2d(x5, kernel_size=3, stride=2))
    r5 = _ref_same_pad_2d(x5, 3, 2)
    ok &= (y5.shape == (2, 3, 11, 161)) and bool(jnp.allclose(y5, r5))

    assert ok, "SamePad2d Pallas kernel mismatch vs jnp.pad reference"
    print("KERNEL_OK")
</pallas_src>

<mosaic_0001>
module attributes {stable_mosaic.version = 11 : i64} {
  func.func @_same_pad_kernel_flat(%arg0: i32, %arg1: memref<8x256xf32, #tpu.memory_space<vmem>>, %arg2: memref<8x324xf32, #tpu.memory_space<vmem>>) attributes {dimension_semantics = [#tpu.dimension_semantics<parallel>], iteration_bounds = array<i64: 1>, scalar_prefetch = 0 : i64, scratch_operands = 0 : i64, tpu.core_type = #tpu.core_type<tc>, window_params = [{transform_indices = @transform_0, window_bounds = array<i64: 8, 256>}, {transform_indices = @transform_1, window_bounds = array<i64: 8, 324>}]} {
    %cst = arith.constant 0.000000e+00 : f32
    %0 = vector.broadcast %cst : f32 to vector<8x19xf32>
    %c0 = arith.constant 0 : index
    %c0_0 = arith.constant 0 : index
    %1 = vector.load %arg2[%c0, %c0_0] : memref<8x324xf32, #tpu.memory_space<vmem>>, vector<8x19xf32>
    tpu.vector_store %arg2[%c0, %c0_0], %0 {strides = array<i32>} : memref<8x324xf32, #tpu.memory_space<vmem>>, vector<8x19xf32>,
    %c0_1 = arith.constant 0 : index
    %c0_2 = arith.constant 0 : index
    %2 = vector.load %arg1[%c0_1, %c0_2] : memref<8x256xf32, #tpu.memory_space<vmem>>, vector<8x16xf32>
    %c0_3 = arith.constant 0 : index
    %c19 = arith.constant 19 : index
    %3 = vector.load %arg2[%c0_3, %c19] : memref<8x324xf32, #tpu.memory_space<vmem>>, vector<8x16xf32>
    tpu.vector_store %arg2[%c0_3, %c19], %2 {strides = array<i32>} : memref<8x324xf32, #tpu.memory_space<vmem>>, vector<8x16xf32>,
    %cst_4 = arith.constant 0.000000e+00 : f32
    %4 = vector.broadcast %cst_4 : f32 to vector<8x2xf32>
    %c0_5 = arith.constant 0 : index
    %c35 = arith.constant 35 : index
    %5 = vector.load %arg2[%c0_5, %c35] : memref<8x324xf32, #tpu.memory_space<vmem>>, vector<8x2xf32>
    tpu.vector_store %arg2[%c0_5, %c35], %4 {strides = array<i32>} : memref<8x324xf32, #tpu.memory_space<vmem>>, vector<8x2xf32>,
    %c0_6 = arith.constant 0 : index
    %c16 = arith.constant 16 : index
    %6 = vector.load %arg1[%c0_6, %c16] : memref<8x256xf32, #tpu.memory_space<vmem>>, vector<8x16xf32>
    %c0_7 = arith.constant 0 : index
    %c37 = arith.constant 37 : index
    %7 = vector.load %arg2[%c0_7, %c37] : memref<8x324xf32, #tpu.memory_space<vmem>>, vector<8x16xf32>
    tpu.vector_store %arg2[%c0_7, %c37], %6 {strides = array<i32>} : memref<8x324xf32, #tpu.memory_space<vmem>>, vector<8x16xf32>,
    %cst_8 = arith.constant 0.000000e+00 : f32
    %8 = vector.broadcast %cst_8 : f32 to vector<8x2xf32>
    %c0_9 = arith.constant 0 : index
    %c53 = arith.constant 53 : index
    %9 = vector.load %arg2[%c0_9, %c53] : memref<8x324xf32, #tpu.memory_space<vmem>>, vector<8x2xf32>
    tpu.vector_store %arg2[%c0_9, %c53], %8 {strides = array<i32>} : memref<8x324xf32, #tpu.memory_space<vmem>>, vector<8x2xf32>,
    %c0_10 = arith.constant 0 : index
    %c32 = arith.constant 32 : index
    %10 = vector.load %arg1[%c0_10, %c32] : memref<8x256xf32, #tpu.memory_space<vmem>>, vector<8x16xf32>
    %c0_11 = arith.constant 0 : index
    %c55 = arith.constant 55 : index
    %11 = vector.load %arg2[%c0_11, %c55] : memref<8x324xf32, #tpu.memory_space<vmem>>, vector<8x16xf32>
    tpu.vector_store %arg2[%c0_11, %c55], %10 {strides = array<i32>} : memref<8x324xf32, #tpu.memory_space<vmem>>, vector<8x16xf32>,
    %cst_12 = arith.constant 0.000000e+00 : f32
    %12 = vector.broadcast %cst_12 : f32 to vector<8x2xf32>
    %c0_13 = arith.constant 0 : index
    %c71 = arith.constant 71 : index
    %13 = vector.load %arg2[%c0_13, %c71] : memref<8x324xf32, #tpu.memory_space<vmem>>, vector<8x2xf32>
    tpu.vector_store %arg2[%c0_13, %c71], %12 {strides = array<i32>} : memref<8x324xf32, #tpu.memory_space<vmem>>, vector<8x2xf32>,
    %c0_14 = arith.constant 0 : index
    %c48 = arith.constant 48 : index
    %14 = vector.load %arg1[%c0_14, %c48] : memref<8x256xf32, #tpu.memory_space<vmem>>, vector<8x16xf32>
    %c0_15 = arith.constant 0 : index
    %c73 = arith.constant 73 : index
    %15 = vector.load %arg2[%c0_15, %c73] : memref<8x324xf32, #tpu.memory_space<vmem>>, vector<8x16xf32>
    tpu.vector_store %arg2[%c0_15, %c73], %14 {strides = array<i32>} : memref<8x324xf32, #tpu.memory_space<vmem>>, vector<8x16xf32>,
    %cst_16 = arith.constant 0.000000e+00 : f32
    %16 = vector.broadcast %cst_16 : f32 to vector<8x2xf32>
    %c0_17 = arith.constant 0 : index
    %c89 = arith.constant 89 : index
    %17 = vector.load %arg2[%c0_17, %c89] : memref<8x324xf32, #tpu.memory_space<vmem>>, vector<8x2xf32>
    tpu.vector_store %arg2[%c0_17, %c89], %16 {strides = array<i32>} : memref<8x324xf32, #tpu.memory_space<vmem>>, vector<8x2xf32>,
    %c0_18 = arith.constant 0 : index
    %c64 = arith.constant 64 : index
    %18 = vector.load %arg1[%c0_18, %c64] : memref<8x256xf32, #tpu.memory_space<vmem>>, vector<8x16xf32>
    %c0_19 = arith.constant 0 : index
    %c91 = arith.constant 91 : index
    %19 = vector.load %arg2[%c0_19, %c91] : memref<8x324xf32, #tpu.memory_space<vmem>>, vector<8x16xf32>
    tpu.vector_store %arg2[%c0_19, %c91], %18 {strides = array<i32>} : memref<8x324xf32, #tpu.memory_space<vmem>>, vector<8x16xf32>,
    %cst_20 = arith.constant 0.000000e+00 : f32
    %20 = vector.broadcast %cst_20 : f32 to vector<8x2xf32>
    %c0_21 = arith.constant 0 : index
    %c107 = arith.constant 107 : index
    %21 = vector.load %arg2[%c0_21, %c107] : memref<8x324xf32, #tpu.memory_space<vmem>>, vector<8x2xf32>
    tpu.vector_store %arg2[%c0_21, %c107], %20 {strides = array<i32>} : memref<8x324xf32, #tpu.memory_space<vmem>>, vector<8x2xf32>,
    %c0_22 = arith.constant 0 : index
    %c80 = arith.constant 80 : index
    %22 = vector.load %arg1[%c0_22, %c80] : memref<8x256xf32, #tpu.memory_space<vmem>>, vector<8x16xf32>
    %c0_23 = arith.constant 0 : index
    %c109 = arith.constant 109 : index
    %23 = vector.load %arg2[%c0_23, %c109] : memref<8x324xf32, #tpu.memory_space<vmem>>, vector<8x16xf32>
    tpu.vector_store %arg2[%c0_23, %c109], %22 {strides = array<i32>} : memref<8x324xf32, #tpu.memory_space<vmem>>, vector<8x16xf32>,
    %cst_24 = arith.constant 0.000000e+00 : f32
    %24 = vector.broadcast %cst_24 : f32 to vector<8x2xf32>
    %c0_25 = arith.constant 0 : index
    %c125 = arith.constant 125 : index
    %25 = vector.load %arg2[%c0_25, %c125] : memref<8x324xf32, #tpu.memory_space<vmem>>, vector<8x2xf32>
    tpu.vector_store %arg2[%c0_25, %c125], %24 {strides = array<i32>} : memref<8x324xf32, #tpu.memory_space<vmem>>, vector<8x2xf32>,
    %c0_26 = arith.constant 0 : index
    %c96 = arith.constant 96 : index
    %26 = vector.load %arg1[%c0_26, %c96] : memref<8x256xf32, #tpu.memory_space<vmem>>, vector<8x16xf32>
    %c0_27 = arith.constant 0 : index
    %c127 = arith.constant 127 : index
    %27 = vector.load %arg2[%c0_27, %c127] : memref<8x324xf32, #tpu.memory_space<vmem>>, vector<8x16xf32>
    tpu.vector_store %arg2[%c0_27, %c127], %26 {strides = array<i32>} : memref<8x324xf32, #tpu.memory_space<vmem>>, vector<8x16xf32>,
    %cst_28 = arith.constant 0.000000e+00 : f32
    %28 = vector.broadcast %cst_28 : f32 to vector<8x2xf32>
    %c0_29 = arith.constant 0 : index
    %c143 = arith.constant 143 : index
    %29 = vector.load %arg2[%c0_29, %c143] : memref<8x324xf32, #tpu.memory_space<vmem>>, vector<8x2xf32>
    tpu.vector_store %arg2[%c0_29, %c143], %28 {strides = array<i32>} : memref<8x324xf32, #tpu.memory_space<vmem>>, vector<8x2xf32>,
    %c0_30 = arith.constant 0 : index
    %c112 = arith.constant 112 : index
    %30 = vector.load %arg1[%c0_30, %c112] : memref<8x256xf32, #tpu.memory_space<vmem>>, vector<8x16xf32>
    %c0_31 = arith.constant 0 : index
    %c145 = arith.constant 145 : index
    %31 = vector.load %arg2[%c0_31, %c145] : memref<8x324xf32, #tpu.memory_space<vmem>>, vector<8x16xf32>
    tpu.vector_store %arg2[%c0_31, %c145], %30 {strides = array<i32>} : memref<8x324xf32, #tpu.memory_space<vmem>>, vector<8x16xf32>,
    %cst_32 = arith.constant 0.000000e+00 : f32
    %32 = vector.broadcast %cst_32 : f32 to vector<8x2xf32>
    %c0_33 = arith.constant 0 : index
    %c161 = arith.constant 161 : index
    %33 = vector.load %arg2[%c0_33, %c161] : memref<8x324xf32, #tpu.memory_space<vmem>>, vector<8x2xf32>
    tpu.vector_store %arg2[%c0_33, %c161], %32 {strides = array<i32>} : memref<8x324xf32, #tpu.memory_space<vmem>>, vector<8x2xf32>,
    %c0_34 = arith.constant 0 : index
    %c128 = arith.constant 128 : index
    %34 = vector.load %arg1[%c0_34, %c128] : memref<8x256xf32, #tpu.memory_space<vmem>>, vector<8x16xf32>
    %c0_35 = arith.constant 0 : index
    %c163 = arith.constant 163 : index
    %35 = vector.load %arg2[%c0_35, %c163] : memref<8x324xf32, #tpu.memory_space<vmem>>, vector<8x16xf32>
    tpu.vector_store %arg2[%c0_35, %c163], %34 {strides = array<i32>} : memref<8x324xf32, #tpu.memory_space<vmem>>, vector<8x16xf32>,
    %cst_36 = arith.constant 0.000000e+00 : f32
    %36 = vector.broadcast %cst_36 : f32 to vector<8x2xf32>
    %c0_37 = arith.constant 0 : index
    %c179 = arith.constant 179 : index
    %37 = vector.load %arg2[%c0_37, %c179] : memref<8x324xf32, #tpu.memory_space<vmem>>, vector<8x2xf32>
    tpu.vector_store %arg2[%c0_37, %c179], %36 {strides = array<i32>} : memref<8x324xf32, #tpu.memory_space<vmem>>, vector<8x2xf32>,
    %c0_38 = arith.constant 0 : index
    %c144 = arith.constant 144 : index
    %38 = vector.load %arg1[%c0_38, %c144] : memref<8x256xf32, #tpu.memory_space<vmem>>, vector<8x16xf32>
    %c0_39 = arith.constant 0 : index
    %c181 = arith.constant 181 : index
    %39 = vector.load %arg2[%c0_39, %c181] : memref<8x324xf32, #tpu.memory_space<vmem>>, vector<8x16xf32>
    tpu.vector_store %arg2[%c0_39, %c181], %38 {strides = array<i32>} : memref<8x324xf32, #tpu.memory_space<vmem>>, vector<8x16xf32>,
    %cst_40 = arith.constant 0.000000e+00 : f32
    %40 = vector.broadcast %cst_40 : f32 to vector<8x2xf32>
    %c0_41 = arith.constant 0 : index
    %c197 = arith.constant 197 : index
    %41 = vector.load %arg2[%c0_41, %c197] : memref<8x324xf32, #tpu.memory_space<vmem>>, vector<8x2xf32>
    tpu.vector_store %arg2[%c0_41, %c197], %40 {strides = array<i32>} : memref<8x324xf32, #tpu.memory_space<vmem>>, vector<8x2xf32>,
    %c0_42 = arith.constant 0 : index
    %c160 = arith.constant 160 : index
    %42 = vector.load %arg1[%c0_42, %c160] : memref<8x256xf32, #tpu.memory_space<vmem>>, vector<8x16xf32>
    %c0_43 = arith.constant 0 : index
    %c199 = arith.constant 199 : index
    %43 = vector.load %arg2[%c0_43, %c199] : memref<8x324xf32, #tpu.memory_space<vmem>>, vector<8x16xf32>
    tpu.vector_store %arg2[%c0_43, %c199], %42 {strides = array<i32>} : memref<8x324xf32, #tpu.memory_space<vmem>>, vector<8x16xf32>,
    %cst_44 = arith.constant 0.000000e+00 : f32
    %44 = vector.broadcast %cst_44 : f32 to vector<8x2xf32>
    %c0_45 = arith.constant 0 : index
    %c215 = arith.constant 215 : index
    %45 = vector.load %arg2[%c0_45, %c215] : memref<8x324xf32, #tpu.memory_space<vmem>>, vector<8x2xf32>
    tpu.vector_store %arg2[%c0_45, %c215], %44 {strides = array<i32>} : memref<8x324xf32, #tpu.memory_space<vmem>>, vector<8x2xf32>,
    %c0_46 = arith.constant 0 : index
    %c176 = arith.constant 176 : index
    %46 = vector.load %arg1[%c0_46, %c176] : memref<8x256xf32, #tpu.memory_space<vmem>>, vector<8x16xf32>
    %c0_47 = arith.constant 0 : index
    %c217 = arith.constant 217 : index
    %47 = vector.load %arg2[%c0_47, %c217] : memref<8x324xf32, #tpu.memory_space<vmem>>, vector<8x16xf32>
    tpu.vector_store %arg2[%c0_47, %c217], %46 {strides = array<i32>} : memref<8x324xf32, #tpu.memory_space<vmem>>, vector<8x16xf32>,
    %cst_48 = arith.constant 0.000000e+00 : f32
    %48 = vector.broadcast %cst_48 : f32 to vector<8x2xf32>
    %c0_49 = arith.constant 0 : index
    %c233 = arith.constant 233 : index
    %49 = vector.load %arg2[%c0_49, %c233] : memref<8x324xf32, #tpu.memory_space<vmem>>, vector<8x2xf32>
    tpu.vector_store %arg2[%c0_49, %c233], %48 {strides = array<i32>} : memref<8x324xf32, #tpu.memory_space<vmem>>, vector<8x2xf32>,
    %c0_50 = arith.constant 0 : index
    %c192 = arith.constant 192 : index
    %50 = vector.load %arg1[%c0_50, %c192] : memref<8x256xf32, #tpu.memory_space<vmem>>, vector<8x16xf32>
    %c0_51 = arith.constant 0 : index
    %c235 = arith.constant 235 : index
    %51 = vector.load %arg2[%c0_51, %c235] : memref<8x324xf32, #tpu.memory_space<vmem>>, vector<8x16xf32>
    tpu.vector_store %arg2[%c0_51, %c235], %50 {strides = array<i32>} : memref<8x324xf32, #tpu.memory_space<vmem>>, vector<8x16xf32>,
    %cst_52 = arith.constant 0.000000e+00 : f32
    %52 = vector.broadcast %cst_52 : f32 to vector<8x2xf32>
    %c0_53 = arith.constant 0 : index
    %c251 = arith.constant 251 : index
    %53 = vector.load %arg2[%c0_53, %c251] : memref<8x324xf32, #tpu.memory_space<vmem>>, vector<8x2xf32>
    tpu.vector_store %arg2[%c0_53, %c251], %52 {strides = array<i32>} : memref<8x324xf32, #tpu.memory_space<vmem>>, vector<8x2xf32>,
    %c0_54 = arith.constant 0 : index
    %c208 = arith.constant 208 : index
    %54 = vector.load %arg1[%c0_54, %c208] : memref<8x256xf32, #tpu.memory_space<vmem>>, vector<8x16xf32>
    %c0_55 = arith.constant 0 : index
    %c253 = arith.constant 253 : index
    %55 = vector.load %arg2[%c0_55, %c253] : memref<8x324xf32, #tpu.memory_space<vmem>>, vector<8x16xf32>
    tpu.vector_store %arg2[%c0_55, %c253], %54 {strides = array<i32>} : memref<8x324xf32, #tpu.memory_space<vmem>>, vector<8x16xf32>,
    %cst_56 = arith.constant 0.000000e+00 : f32
    %56 = vector.broadcast %cst_56 : f32 to vector<8x2xf32>
    %c0_57 = arith.constant 0 : index
    %c269 = arith.constant 269 : index
    %57 = vector.load %arg2[%c0_57, %c269] : memref<8x324xf32, #tpu.memory_space<vmem>>, vector<8x2xf32>
    tpu.vector_store %arg2[%c0_57, %c269], %56 {strides = array<i32>} : memref<8x324xf32, #tpu.memory_space<vmem>>, vector<8x2xf32>,
    %c0_58 = arith.constant 0 : index
    %c224 = arith.constant 224 : index
    %58 = vector.load %arg1[%c0_58, %c224] : memref<8x256xf32, #tpu.memory_space<vmem>>, vector<8x16xf32>
    %c0_59 = arith.constant 0 : index
    %c271 = arith.constant 271 : index
    %59 = vector.load %arg2[%c0_59, %c271] : memref<8x324xf32, #tpu.memory_space<vmem>>, vector<8x16xf32>
    tpu.vector_store %arg2[%c0_59, %c271], %58 {strides = array<i32>} : memref<8x324xf32, #tpu.memory_space<vmem>>, vector<8x16xf32>,
    %cst_60 = arith.constant 0.000000e+00 : f32
    %60 = vector.broadcast %cst_60 : f32 to vector<8x2xf32>
    %c0_61 = arith.constant 0 : index
    %c287 = arith.constant 287 : index
    %61 = vector.load %arg2[%c0_61, %c287] : memref<8x324xf32, #tpu.memory_space<vmem>>, vector<8x2xf32>
    tpu.vector_store %arg2[%c0_61, %c287], %60 {strides = array<i32>} : memref<8x324xf32, #tpu.memory_space<vmem>>, vector<8x2xf32>,
    %c0_62 = arith.constant 0 : index
    %c240 = arith.constant 240 : index
    %62 = vector.load %arg1[%c0_62, %c240] : memref<8x256xf32, #tpu.memory_space<vmem>>, vector<8x16xf32>
    %c0_63 = arith.constant 0 : index
    %c289 = arith.constant 289 : index
    %63 = vector.load %arg2[%c0_63, %c289] : memref<8x324xf32, #tpu.memory_space<vmem>>, vector<8x16xf32>
    tpu.vector_store %arg2[%c0_63, %c289], %62 {strides = array<i32>} : memref<8x324xf32, #tpu.memory_space<vmem>>, vector<8x16xf32>,
    %cst_64 = arith.constant 0.000000e+00 : f32
    %64 = vector.broadcast %cst_64 : f32 to vector<8x19xf32>
    %c0_65 = arith.constant 0 : index
    %c305 = arith.constant 305 : index
    %65 = vector.load %arg2[%c0_65, %c305] : memref<8x324xf32, #tpu.memory_space<vmem>>, vector<8x19xf32>
    tpu.vector_store %arg2[%c0_65, %c305], %64 {strides = array<i32>} : memref<8x324xf32, #tpu.memory_space<vmem>>, vector<8x19xf32>,
    return
  }
  func.func @transform_0(%arg0: i32) -> (i32, i32) {
    %c0_i32 = arith.constant 0 : i32
    %c0_i32_0 = arith.constant 0 : i32
    return %arg0, %c0_i32 : i32, i32
  }
  func.func @transform_1(%arg0: i32) -> (i32, i32) {
    %c0_i32 = arith.constant 0 : i32
    %c0_i32_0 = arith.constant 0 : i32
    return %arg0, %c0_i32 : i32, i32
  }
}

</mosaic_0001>

<bundles_post_ra>
// kernel: same_pad_2d.1
= control target key start
LH: loop header
LB: loop body
LE: loop exit
PB: predicated region body
PF: predicated region fallthrough
CT: control target
= control target key end

     0   :  { %vm8_vm0 = vcmask 154624   ;;  %s179_s8 = smov 33   ;;  %s180_s9 = smov 31   ;;  %v181_v1 = vmov 0.0   ;;  %vm71_vm1 = vcmask 121856   ;;  %vm73_vm2 = vcmask 138360   ;;  %s338_s0 = inlined_call_operand.vmem [shape: f32[8,256], index: 0, kind: input, shape index: {}]   ;;  %s339_s1 = inlined_call_operand.vmem [shape: f32[8,324], index: 1, kind: output, shape index: {}]  }
   0x1   :  { %v75_v0 = vld [vmem:[%s338_s0] sm:$0xff]  ;;  %9 = vst.msk [vmem:[%s339_s1] sm:$0xff] %vm8_vm0, %v181_v1  ;;  %s182_s12 = smov 21   ;;  %s183_s13 = smov 19   ;;  %v84_v2 = vld [vmem:[%s338_s0 + $0x8] sm:$0xff]  ;;  %vm80_vm3 = vcmask 269448  }
   0x2   :  { %77 = vrot.lane.b32.xlu1 %v75_v0, %s179_s8  ;;  %66 = vrot.lane.b32.xlu0 %v75_v0, %s180_s9  ;;  %s184_s16 = smov 23   ;;  %s185_s17 = smov 35   ;;  %vm82_vm4 = vcmask 285960   ;;  %vm15_vm5 = vcmask 285848   ;;  %vm17_vm6 = vcmask 302360   ;;  %vm24_vm7 = vcmask 433448  }
   0x3   :  { %s186_s18 = smov 25   ;;  %s187_s19 = smov 37   ;;  %vm26_vm8 = vcmask 449960   ;;  %vm33_vm9 = vcmask 581048   ;;  %vm89_vm10 = vcmask 417048   ;;  %vm35_vm11 = vcmask 597560  }
   0x4   :  { %s188_s20 = smov 45   ;;  %s189_s21 = smov 39   ;;  %vm91_vm12 = vcmask 433560   ;;  %vm42_vm13 = vcmask 728648   ;;  %vm98_vm14 = vcmask 564648   ;;  %vm100_vm15 = vcmask 581160  }
   0x5   :  { %s190_s22 = smov 41   ;;  %s191_s23 = smov 27   ;;  %vm44_vm0 = vcmask 745160  }
   0x6   :  { %21 = vrot.lane.b32.xlu1 %v75_v0, %s182_s12  ;;  %12 = vrot.lane.b32.xlu0 %v75_v0, %s183_s13  ;;  %s192_s24 = smov 29   ;;  %s193_s25 = smov 47  }
   0x7   :  { %s194_s0 = smov 43   ;;  %s195_s26 = smov 49  }
   0xa   :  { %30 = vrot.lane.b32.xlu1 %v75_v0, %s184_s16  ;;  %86 = vrot.lane.b32.xlu0 %v84_v2, %s185_s17 }
   0xe   :  { %39 = vrot.lane.b32.xlu1 %v75_v0, %s186_s18  ;;  %95 = vrot.lane.b32.xlu0 %v84_v2, %s187_s19 }
  0x12   :  { %131 = vrot.lane.b32.xlu1 %v84_v2, %s188_s20  ;;  %104 = vrot.lane.b32.xlu0 %v84_v2, %s189_s21 }
  0x16   :  { %113 = vrot.lane.b32.xlu1 %v84_v2, %s190_s22  ;;  %48 = vrot.lane.b32.xlu0 %v75_v0, %s191_s23 }
  0x1a   :  { %57 = vrot.lane.b32.xlu1 %v75_v0, %s192_s24  ;;  %142 = vrot.lane.b32.xlu0 %v84_v2, %s193_s25 }
  0x1e   :  { %122 = vrot.lane.b32.xlu0 %v84_v2, %s194_s0  ;;  %151 = vrot.lane.b32.xlu1 %v84_v2, %s195_s26 }
  0x74   :  { %v78_v3 = vpop.permute.xlu1 %77  ;;  %v216_v4 = vpop.permute.xlu0 %66 }
  0x75   :  { %72 = vst.msk [vmem:[%s339_s1 + $0x8] sm:$0xff] %vm71_vm1, %v216_v4  ;;  %vm136_vm1 = vcmask 105472  }
  0x76   :  { %74 = vst.msk [vmem:[%s339_s1 + $0x8] sm:$0xff] %vm73_vm2, %v181_v1  ;;  %vm107_vm2 = vcmask 712248  }
  0x77   :  { %81 = vst.msk [vmem:[%s339_s1 + $0x8] sm:$0xff] %vm80_vm3, %v78_v3  ;;  %vm138_vm3 = vcmask 121960  }
  0x78   :  { %v22_v5 = vpop.permute.xlu1 %21  ;;  %v13_v6 = vpop.permute.xlu0 %12  ;;  %83 = vst.msk [vmem:[%s339_s1 + $0x8] sm:$0xff] %vm82_vm4, %v181_v1  ;;  %vm109_vm4 = vcmask 728760  }
  0x79   :  { %16 = vst.msk [vmem:[%s339_s1] sm:$0xff] %vm15_vm5, %v13_v6  ;;  %vm116_vm5 = vcmask 859848  }
  0x7a   :  { %18 = vst.msk [vmem:[%s339_s1] sm:$0xff] %vm17_vm6, %v181_v1  ;;  %vm51_vm6 = vcmask 876248  }
  0x7b   :  { %25 = vst.msk [vmem:[%s339_s1] sm:$0xff] %vm24_vm7, %v22_v5  ;;  %vm53_vm7 = vcmask 892760  }
  0x7c   :  { %v31_v7 = vpop.permute.xlu1 %30  ;;  %27 = vst.msk [vmem:[%s339_s1] sm:$0xff] %vm26_vm8, %v181_v1  ;;  %v87_v8 = vpop.permute.xlu0 %86  ;;  %vm118_vm8 = vcmask 876360  }
  0x7d   :  { %34 = vst.msk [vmem:[%s339_s1] sm:$0xff] %vm33_vm9, %v31_v7  ;;  %vm60_vm9 = vcmask 1023848  }
  0x7e   :  { %90 = vst.msk [vmem:[%s339_s1 + $0x8] sm:$0xff] %vm89_vm10, %v87_v8  ;;  %vm145_vm10 = vcmask 253048  }
  0x7f   :  { %36 = vst.msk [vmem:[%s339_s1] sm:$0xff] %vm35_vm11, %v181_v1  ;;  %vm62_vm11 = vcmask 1040360  }
  0x80   :  { %92 = vst.msk [vmem:[%s339_s1 + $0x8] sm:$0xff] %vm91_vm12, %v181_v1  ;;  %v40_v9 = vpop.permute.xlu1 %39  ;;  %v96_v10 = vpop.permute.xlu0 %95  ;;  %vm147_vm12 = vcmask 269560  }
  0x81   :  { %43 = vst.msk [vmem:[%s339_s1] sm:$0xff] %vm42_vm13, %v40_v9  ;;  %vm69_vm13 = vcmask 1048568  }
  0x82   :  { %99 = vst.msk [vmem:[%s339_s1 + $0x8] sm:$0xff] %vm98_vm14, %v96_v10  ;;  %vm125_vm14 = vcmask 1007448  }
  0x83   :  { %101 = vst.msk [vmem:[%s339_s1 + $0x8] sm:$0xff] %vm100_vm15, %v181_v1  ;;  %vm154_vm15 = vcmask 400648  }
  0x84   :  { %45 = vst.msk [vmem:[%s339_s1] sm:$0xff] %vm44_vm0, %v181_v1  ;;  %v132_v11 = vpop.permute.xlu1 %131  ;;  %v105_v12 = vpop.permute.xlu0 %104  ;;  %vm127_vm0 = vcmask 1023960  }
  0x85   :  { %137 = vst.msk [vmem:[%s339_s1 + $0x10] sm:$0xff] %vm136_vm1, %v132_v11  ;;  %vm156_vm1 = vcmask 556424  }
  0x86   :  { %108 = vst.msk [vmem:[%s339_s1 + $0x8] sm:$0xff] %vm107_vm2, %v105_v12  ;;  %vm134_vm2 = vcmask 1048552  }
  0x87   :  { %139 = vst.msk [vmem:[%s339_s1 + $0x10] sm:$0xff] %vm138_vm3, %v181_v1 }
  0x88   :  { %110 = vst.msk [vmem:[%s339_s1 + $0x8] sm:$0xff] %vm109_vm4, %v181_v1  ;;  %v114_v13 = vpop.permute.xlu1 %113  ;;  %v49_v14 = vpop.permute.xlu0 %48 }
  0x89   :  { %117 = vst.msk [vmem:[%s339_s1 + $0x8] sm:$0xff] %vm116_vm5, %v114_v13 }
  0x8a   :  { %52 = vst.msk [vmem:[%s339_s1] sm:$0xff] %vm51_vm6, %v49_v14 }
  0x8b   :  { %54 = vst.msk [vmem:[%s339_s1] sm:$0xff] %vm53_vm7, %v181_v1 }
  0x8c   :  { %119 = vst.msk [vmem:[%s339_s1 + $0x8] sm:$0xff] %vm118_vm8, %v181_v1  ;;  %v58_v15 = vpop.permute.xlu1 %57  ;;  %v143_v16 = vpop.permute.xlu0 %142 }
  0x8d   :  { %61 = vst.msk [vmem:[%s339_s1] sm:$0xff] %vm60_vm9, %v58_v15 }
  0x8e   :  { %146 = vst.msk [vmem:[%s339_s1 + $0x10] sm:$0xff] %vm145_vm10, %v143_v16 }
  0x8f   :  { %63 = vst.msk [vmem:[%s339_s1] sm:$0xff] %vm62_vm11, %v181_v1 }
  0x90   :  { %148 = vst.msk [vmem:[%s339_s1 + $0x10] sm:$0xff] %vm147_vm12, %v181_v1  ;;  %v123_v17 = vpop.permute.xlu0 %122  ;;  %v152_v18 = vpop.permute.xlu1 %151 }
  0x91   :  { %70 = vst.msk [vmem:[%s339_s1] sm:$0xff] %vm69_vm13, %v216_v4 }
  0x92   :  { %126 = vst.msk [vmem:[%s339_s1 + $0x8] sm:$0xff] %vm125_vm14, %v123_v17 }
  0x93   :  { %155 = vst.msk [vmem:[%s339_s1 + $0x10] sm:$0xff] %vm154_vm15, %v152_v18 }
  0x94   :  { %128 = vst.msk [vmem:[%s339_s1 + $0x8] sm:$0xff] %vm127_vm0, %v181_v1 }
  0x95   :  { %157 = vst.msk [vmem:[%s339_s1 + $0x10] sm:$0xff] %vm156_vm1, %v181_v1 }
  0x96   :  { %135 = vst.msk [vmem:[%s339_s1 + $0x8] sm:$0xff] %vm134_vm2, %v132_v11 }

</bundles_post_ra>
